<compile_context>
chip_gen: v7x
topology: tpu7x:2x2x1
jax: 0.10.0
libtpu: 0.0.40
codegen_flags: <defaults>
</compile_context>

<pallas_src>
import functools

import jax
import jax.numpy as jnp
from jax.experimental import pallas as pl
from jax.experimental.pallas import tpu as pltpu


def _fused_mha_kernel(x_ref, wqkv_ref, wp_ref, bias_ref, o_ref, acc_ref, *,
                      block_h, head_dim, approx_reciprocal):
    """One grid step = (one batch block, one group of `block_h` heads)."""
    hg = pl.program_id(1)

    @pl.when(hg == 0)
    def _init():
        acc_ref[...] = jnp.zeros_like(acc_ref)

    bb, n, c = x_ref.shape
    g = block_h * head_dim
    cdt = x_ref.dtype  # compute (MXU-operand) dtype; x was pre-cast in the wrapper.

    # (bb, n, c) -> (bb*n, c): leading-dim merge only (free when n % 8 == 0).
    x2d = x_ref[...].reshape(bb * n, c)

    # One wide fused QKV matmul for the whole head group (lane-dense output).
    # The softmax scale is already folded into the Wq columns host-side.
    qkv = jnp.dot(x2d, wqkv_ref[0], preferred_element_type=jnp.float32)  # (bb*n, 3g) f32

    def head_slice(base, j):
        off = base + j * head_dim
        return qkv[:, off:off + head_dim].reshape(bb, n, head_dim).astype(cdt)

    ctx_heads = []
    for j in range(block_h):            # static unroll over heads in the group
        q = head_slice(0, j)            # (bb, n, hd), already scaled
        k = head_slice(g, j)
        v = head_slice(2 * g, j)

        # attn scores on the MXU: transposed contraction, no explicit k transpose.
        s = jnp.einsum("bqd,bkd->bqk", q, k,
                       preferred_element_type=jnp.float32)     # (bb, n, n) f32

        # Numerically-stable softmax with the normalization deferred to the
        # (bb, n, hd) context (unnormalized-softmax trick) instead of the
        # (bb, n, n) probabilities.
        s = s - jnp.max(s, axis=-1, keepdims=True)
        p = jnp.exp(s)
        denom = jnp.sum(p, axis=-1, keepdims=True)             # (bb, n, 1) f32
        # TODO(synk): attn_drop / proj_drop are identities at the module defaults
        # (p=0.0); a p>0 training path would use pltpu.prng_seed / prng_random_bits.

        ctx = jnp.einsum("bqk,bkd->bqd", p.astype(cdt), v,
                         preferred_element_type=jnp.float32)   # (bb, n, hd) f32
        ctx = ctx * pl.reciprocal(denom, approx=approx_reciprocal)
        ctx_heads.append(ctx.astype(cdt))

    # Fused "concat heads + output projection" for the whole group: one matmul
    # with contraction dim g = block_h*hd, accumulated into the resident scratch.
    ctx_g = ctx_heads[0] if block_h == 1 else jnp.concatenate(ctx_heads, axis=-1)
    ctx_g = ctx_g.reshape(bb * n, g)
    proj = jnp.dot(ctx_g, wp_ref[0], preferred_element_type=jnp.float32)  # (bb*n, c)
    acc_ref[...] += proj.reshape(bb, n, c)

    @pl.when(hg == pl.num_programs(1) - 1)
    def _finalize():
        out = acc_ref[...] + bias_ref[...].astype(jnp.float32)  # (1, c) broadcasts
        o_ref[...] = out.astype(o_ref.dtype)


def attention_forward(x, w_qkv, w_proj, b_proj, *, num_heads, block_b=1,
                      block_h=None, matmul_dtype=jnp.bfloat16,
                      approx_reciprocal=False,
                      vmem_limit_bytes=64 * 1024 * 1024):
    """Fused multi-head self-attention forward.

    x:      (B, N, C)
    w_qkv:  (3C, C)  -- torch nn.Linear layout (out, in); qkv_bias=False
    w_proj: (C, C)   -- torch nn.Linear layout (out, in)
    b_proj: (C,)
    matmul_dtype: MXU operand dtype (default bf16); accumulation / softmax stay f32.
    block_b: batch elements per grid step.  Keep B // block_b >= 2 on v7x so both
             TensorCores get work on the "parallel" axis.
    block_h: heads per grid step; auto-picked so block_h*head_dim >= 128 if possible.
    """
    x = jnp.asarray(x)
    w_qkv = jnp.asarray(w_qkv)
    w_proj = jnp.asarray(w_proj)
    b_proj = jnp.asarray(b_proj)

    B, N, C = x.shape
    assert C % num_heads == 0, "C must be divisible by num_heads"
    assert B % block_b == 0, "B must be divisible by block_b"
    hd = C // num_heads
    scale = float(hd) ** (-0.5)

    # Auto head-group size: smallest divisor of num_heads whose lane width
    # (block_h*hd) reaches 128 (lane-dense stores / decent MXU N-dim fill);
    # otherwise take all heads in one group.
    if block_h is None:
        block_h = num_heads
        for cand in range(1, num_heads + 1):
            if num_heads % cand == 0 and cand * hd >= 128:
                block_h = cand
                break
    assert num_heads % block_h == 0, "num_heads must be divisible by block_h"
    n_groups = num_heads // block_h
    g = block_h * hd

    cdt = jnp.dtype(matmul_dtype) if matmul_dtype is not None else x.dtype

    # Host-side layout plumbing (torch Linear computes y = x @ W.T), done once:
    #  * softmax scale folded into the Wq columns (free in-kernel),
    #  * per-head-group (C, g) column tiles, Wq|Wk|Wv concatenated along lanes
    #    so the kernel does a single fused QKV matmul per step,
    #  * per-head-group (g, C) Wproj row tiles for the fused concat+projection.
    wq = w_qkv[0 * C:1 * C].T * scale
    wk = w_qkv[1 * C:2 * C].T
    wv = w_qkv[2 * C:3 * C].T

    def group_cols(w):  # (C, C) -> (n_groups, C, g); columns ordered (head, hd)
        return w.reshape(C, n_groups, g).transpose(1, 0, 2)

    wqkv_g = jnp.concatenate(
        [group_cols(wq), group_cols(wk), group_cols(wv)], axis=-1).astype(cdt)
    wp_g = w_proj.T.reshape(n_groups, g, C).astype(cdt)
    bias = b_proj.reshape(1, C)

    # Hoisted cast: x is cast to the compute dtype once here (also halves DMA
    # bytes for bf16) instead of once per head-group step inside the kernel.
    x_c = x.astype(cdt)

    kernel = functools.partial(
        _fused_mha_kernel, block_h=block_h, head_dim=hd,
        approx_reciprocal=approx_reciprocal)

    grid = (B // block_b, n_groups)
    return pl.pallas_call(
        kernel,
        out_shape=jax.ShapeDtypeStruct((B, N, C), x.dtype),
        grid_spec=pltpu.PrefetchScalarGridSpec(
            num_scalar_prefetch=0,
            grid=grid,
            in_specs=[
                pl.BlockSpec((block_b, N, C), lambda b, h: (b, 0, 0)),  # x (resident over h)
                pl.BlockSpec((1, C, 3 * g), lambda b, h: (h, 0, 0)),    # fused Wq|Wk|Wv group tile
                pl.BlockSpec((1, g, C), lambda b, h: (h, 0, 0)),        # Wproj group tile
                pl.BlockSpec((1, C), lambda b, h: (0, 0)),              # bias
            ],
            out_specs=pl.BlockSpec((block_b, N, C), lambda b, h: (b, 0, 0)),
            scratch_shapes=[pltpu.VMEM((block_b, N, C), jnp.float32)],
        ),
        compiler_params=pltpu.CompilerParams(
            dimension_semantics=("parallel", "arbitrary"),
            vmem_limit_bytes=vmem_limit_bytes),
    )(x_c, wqkv_g, wp_g, bias)


def attention_reference(x, w_qkv, w_proj, b_proj, *, num_heads):
    """Pure-JAX reference mirroring the PyTorch forward exactly."""
    B, N, C = x.shape
    hd = C // num_heads
    scale = float(hd) ** (-0.5)
    qkv = jnp.einsum("bnc,oc->bno", x, w_qkv)                 # (B, N, 3C)
    qkv = qkv.reshape(B, N, 3, num_heads, hd).transpose(2, 0, 3, 1, 4)
    q, k, v = qkv[0], qkv[1], qkv[2]                          # (B, H, N, hd)
    attn = jnp.einsum("bhqd,bhkd->bhqk", q, k) * scale
    attn = jax.nn.softmax(attn, axis=-1)
    out = jnp.einsum("bhqk,bhkd->bhqd", attn, v)              # (B, H, N, hd)
    out = out.transpose(0, 2, 1, 3).reshape(B, N, C)
    out = jnp.einsum("bnc,oc->bno", out, w_proj) + b_proj
    return out


if __name__ == "__main__":
    # Small shapes consistent with the module: B=2, N=16, C=32, heads=4.
    B, N, C = 2, 16, 32
    num_heads = 4

    key = jax.random.PRNGKey(0)
    kx, kqkv, kproj, kb = jax.random.split(key, 4)

    x = jax.random.normal(kx, (B, N, C), dtype=jnp.float32)
    # PyTorch nn.Linear weight layout: (out_features, in_features).
    w_qkv = jax.random.normal(kqkv, (3 * C, C), dtype=jnp.float32) * 0.05
    w_proj = jax.random.normal(kproj, (C, C), dtype=jnp.float32) * 0.05
    b_proj = jax.random.normal(kb, (C,), dtype=jnp.float32) * 0.05

    ref = attention_reference(x, w_qkv, w_proj, b_proj, num_heads=num_heads)

    # 1) f32 MXU-operand path, auto head grouping (all 4 heads in one group):
    #    strict numerical check against the reference.
    out_f32 = attention_forward(x, w_qkv, w_proj, b_proj, num_heads=num_heads,
                                matmul_dtype=jnp.float32)
    out_f32 = jax.block_until_ready(out_f32)
    assert out_f32.shape == (B, N, C)
    assert jnp.allclose(out_f32, ref, atol=1e-4, rtol=1e-4), (
        "Pallas kernel (f32 operands) disagrees with reference")

    # 2) f32 path with two head groups (exercises the head-group reduction axis
    #    and the accumulator across groups) and a multi-batch block per step.
    out_hg = attention_forward(x, w_qkv, w_proj, b_proj, num_heads=num_heads,
                               block_b=2, block_h=2, matmul_dtype=jnp.float32)
    out_hg = jax.block_until_ready(out_hg)
    assert jnp.allclose(out_hg, ref, atol=1e-4, rtol=1e-4), (
        "Pallas kernel (f32, grouped heads) disagrees with reference")

    # 3) Default path: bf16 MXU operands (v5e/v6e/v7x peak path), fused QKV,
    #    unnormalized softmax + EUP approximate reciprocal (looser tolerance).
    out_def = attention_forward(x, w_qkv, w_proj, b_proj, num_heads=num_heads,
                                approx_reciprocal=True)
    out_def = jax.block_until_ready(out_def)
    assert out_def.shape == (B, N, C)
    assert jnp.allclose(out_def, ref, atol=3e-2, rtol=3e-2), (
        "Pallas kernel (bf16 operands) disagrees with reference")

    print("KERNEL_OK")
</pallas_src>

<mosaic_0001>
module attributes {stable_mosaic.version = 11 : i64} {
  func.func @_fused_mha_kernel(%arg0: i32, %arg1: i32, %arg2: memref<1x16x32xf32, #tpu.memory_space<vmem>>, %arg3: memref<1x32x96xf32, #tpu.memory_space<vmem>>, %arg4: memref<1x32x32xf32, #tpu.memory_space<vmem>>, %arg5: memref<1x32xf32, #tpu.memory_space<vmem>>, %arg6: memref<1x16x32xf32, #tpu.memory_space<vmem>>, %arg7: memref<1x16x32xf32, #tpu.memory_space<vmem>>) attributes {dimension_semantics = [#tpu.dimension_semantics<parallel>, #tpu.dimension_semantics<arbitrary>], iteration_bounds = array<i64: 2, 1>, scalar_prefetch = 0 : i64, scratch_operands = 1 : i64, tpu.core_type = #tpu.core_type<tc>, window_params = [{transform_indices = @transform_0, window_bounds = array<i64: 1, 16, 32>}, {transform_indices = @transform_1, window_bounds = array<i64: 1, 32, 96>}, {transform_indices = @transform_2, window_bounds = array<i64: 1, 32, 32>}, {pipeline_mode = #tpu.pipeline_mode<synchronous>, transform_indices = @transform_3, window_bounds = array<i64: 1, 32>}, {transform_indices = @transform_4, window_bounds = array<i64: 1, 16, 32>}]} {
    %c0_i32 = arith.constant 0 : i32
    %0 = arith.cmpi eq, %arg1, %c0_i32 : i32
    %1 = arith.extui %0 : i1 to i32
    %c0_i32_0 = arith.constant 0 : i32
    %2 = arith.cmpi ne, %1, %c0_i32_0 : i32
    scf.if %2 {
      %cst_34 = arith.constant 0.000000e+00 : f32
      %92 = vector.broadcast %cst_34 : f32 to vector<1x16x32xf32>
      %c0_35 = arith.constant 0 : index
      %c0_36 = arith.constant 0 : index
      %c0_37 = arith.constant 0 : index
      %93 = vector.load %arg7[%c0_35, %c0_36, %c0_37] : memref<1x16x32xf32, #tpu.memory_space<vmem>>, vector<1x16x32xf32>
      tpu.vector_store %arg7[%c0_35, %c0_36, %c0_37], %92 {strides = array<i32>} : memref<1x16x32xf32, #tpu.memory_space<vmem>>, vector<1x16x32xf32>,
    } else {
    }
    %c0 = arith.constant 0 : index
    %c0_1 = arith.constant 0 : index
    %c0_2 = arith.constant 0 : index
    %3 = vector.load %arg2[%c0, %c0_1, %c0_2] : memref<1x16x32xf32, #tpu.memory_space<vmem>>, vector<1x16x32xf32>
    %4 = vector.shape_cast %3 : vector<1x16x32xf32> to vector<16x32xf32>
    %c0_3 = arith.constant 0 : index
    %c0_4 = arith.constant 0 : index
    %c0_5 = arith.constant 0 : index
    %5 = vector.load %arg3[%c0_3, %c0_4, %c0_5] : memref<1x32x96xf32, #tpu.memory_space<vmem>>, vector<1x32x96xf32>
    %6 = vector.shape_cast %5 : vector<1x32x96xf32> to vector<32x96xf32>
    %cst = arith.constant dense<0.000000e+00> : vector<16x96xf32>
    %7 = tpu.matmul %4, %6, %cst {dimension_numbers = #tpu.dot_dimension_numbers<[1], [0], [0], [1], [0, 0, 1, 1], [], []>} : vector<16x32xf32>, vector<32x96xf32>, vector<16x96xf32> -> vector<16x96xf32>
    %8 = vector.extract_strided_slice %7 {offsets = [0, 0], sizes = [16, 8], strides = [1, 1]} : vector<16x96xf32> to vector<16x8xf32>
    %9 = vector.shape_cast %8 : vector<16x8xf32> to vector<1x16x8xf32>
    %10 = vector.extract_strided_slice %7 {offsets = [0, 32], sizes = [16, 8], strides = [1, 1]} : vector<16x96xf32> to vector<16x8xf32>
    %11 = vector.shape_cast %10 : vector<16x8xf32> to vector<1x16x8xf32>
    %12 = vector.extract_strided_slice %7 {offsets = [0, 64], sizes = [16, 8], strides = [1, 1]} : vector<16x96xf32> to vector<16x8xf32>
    %13 = vector.shape_cast %12 : vector<16x8xf32> to vector<1x16x8xf32>
    "tpu.trace_start"() <{level = 10 : i32, message = "bqd,bkd->bqk"}> : () -> ()
    %cst_6 = arith.constant dense<0.000000e+00> : vector<1x16x16xf32>
    %14 = tpu.matmul %9, %11, %cst_6 {dimension_numbers = #tpu.dot_dimension_numbers<[2], [2], [1], [1], [0, 0, 0, 1, 1, 1], [0], [0]>} : vector<1x16x8xf32>, vector<1x16x8xf32>, vector<1x16x16xf32> -> vector<1x16x16xf32>
    "tpu.trace_stop"() : () -> ()
    %cst_7 = arith.constant dense<0xFF800000> : vector<1x16xf32>
    %15 = vector.multi_reduction <maximumf>, %14, %cst_7 [2] : vector<1x16x16xf32> to vector<1x16xf32>
    %16 = vector.shape_cast %15 : vector<1x16xf32> to vector<1x16x1xf32>
    %17 = vector.broadcast %16 : vector<1x16x1xf32> to vector<1x16x16xf32>
    %18 = arith.subf %14, %17 : vector<1x16x16xf32>
    %19 = math.exp %18 : vector<1x16x16xf32>
    %cst_8 = arith.constant dense<0.000000e+00> : vector<1x16xf32>
    %20 = vector.multi_reduction <add>, %19, %cst_8 [2] : vector<1x16x16xf32> to vector<1x16xf32>
    %21 = vector.shape_cast %20 : vector<1x16xf32> to vector<1x16x1xf32>
    "tpu.trace_start"() <{level = 10 : i32, message = "bqk,bkd->bqd"}> : () -> ()
    %cst_9 = arith.constant dense<0.000000e+00> : vector<1x16x8xf32>
    %22 = tpu.matmul %19, %13, %cst_9 {dimension_numbers = #tpu.dot_dimension_numbers<[2], [1], [1], [2], [0, 0, 0, 1, 1, 2], [0], [0]>} : vector<1x16x16xf32>, vector<1x16x8xf32>, vector<1x16x8xf32> -> vector<1x16x8xf32>
    "tpu.trace_stop"() : () -> ()
    %23 = tpu.reciprocal %21 : vector<1x16x1xf32> -> vector<1x16x1xf32>
    %24 = vector.broadcast %23 : vector<1x16x1xf32> to vector<1x16x8xf32>
    %25 = arith.mulf %22, %24 : vector<1x16x8xf32>
    %26 = vector.extract_strided_slice %7 {offsets = [0, 8], sizes = [16, 8], strides = [1, 1]} : vector<16x96xf32> to vector<16x8xf32>
    %27 = vector.shape_cast %26 : vector<16x8xf32> to vector<1x16x8xf32>
    %28 = vector.extract_strided_slice %7 {offsets = [0, 40], sizes = [16, 8], strides = [1, 1]} : vector<16x96xf32> to vector<16x8xf32>
    %29 = vector.shape_cast %28 : vector<16x8xf32> to vector<1x16x8xf32>
    %30 = vector.extract_strided_slice %7 {offsets = [0, 72], sizes = [16, 8], strides = [1, 1]} : vector<16x96xf32> to vector<16x8xf32>
    %31 = vector.shape_cast %30 : vector<16x8xf32> to vector<1x16x8xf32>
    "tpu.trace_start"() <{level = 10 : i32, message = "bqd,bkd->bqk"}> : () -> ()
    %cst_10 = arith.constant dense<0.000000e+00> : vector<1x16x16xf32>
    %32 = tpu.matmul %27, %29, %cst_10 {dimension_numbers = #tpu.dot_dimension_numbers<[2], [2], [1], [1], [0, 0, 0, 1, 1, 1], [0], [0]>} : vector<1x16x8xf32>, vector<1x16x8xf32>, vector<1x16x16xf32> -> vector<1x16x16xf32>
    "tpu.trace_stop"() : () -> ()
    %cst_11 = arith.constant dense<0xFF800000> : vector<1x16xf32>
    %33 = vector.multi_reduction <maximumf>, %32, %cst_11 [2] : vector<1x16x16xf32> to vector<1x16xf32>
    %34 = vector.shape_cast %33 : vector<1x16xf32> to vector<1x16x1xf32>
    %35 = vector.broadcast %34 : vector<1x16x1xf32> to vector<1x16x16xf32>
    %36 = arith.subf %32, %35 : vector<1x16x16xf32>
    %37 = math.exp %36 : vector<1x16x16xf32>
    %cst_12 = arith.constant dense<0.000000e+00> : vector<1x16xf32>
    %38 = vector.multi_reduction <add>, %37, %cst_12 [2] : vector<1x16x16xf32> to vector<1x16xf32>
    %39 = vector.shape_cast %38 : vector<1x16xf32> to vector<1x16x1xf32>
    "tpu.trace_start"() <{level = 10 : i32, message = "bqk,bkd->bqd"}> : () -> ()
    %cst_13 = arith.constant dense<0.000000e+00> : vector<1x16x8xf32>
    %40 = tpu.matmul %37, %31, %cst_13 {dimension_numbers = #tpu.dot_dimension_numbers<[2], [1], [1], [2], [0, 0, 0, 1, 1, 2], [0], [0]>} : vector<1x16x16xf32>, vector<1x16x8xf32>, vector<1x16x8xf32> -> vector<1x16x8xf32>
    "tpu.trace_stop"() : () -> ()
    %41 = tpu.reciprocal %39 : vector<1x16x1xf32> -> vector<1x16x1xf32>
    %42 = vector.broadcast %41 : vector<1x16x1xf32> to vector<1x16x8xf32>
    %43 = arith.mulf %40, %42 : vector<1x16x8xf32>
    %44 = vector.extract_strided_slice %7 {offsets = [0, 16], sizes = [16, 8], strides = [1, 1]} : vector<16x96xf32> to vector<16x8xf32>
    %45 = vector.shape_cast %44 : vector<16x8xf32> to vector<1x16x8xf32>
    %46 = vector.extract_strided_slice %7 {offsets = [0, 48], sizes = [16, 8], strides = [1, 1]} : vector<16x96xf32> to vector<16x8xf32>
    %47 = vector.shape_cast %46 : vector<16x8xf32> to vector<1x16x8xf32>
    %48 = vector.extract_strided_slice %7 {offsets = [0, 80], sizes = [16, 8], strides = [1, 1]} : vector<16x96xf32> to vector<16x8xf32>
    %49 = vector.shape_cast %48 : vector<16x8xf32> to vector<1x16x8xf32>
    "tpu.trace_start"() <{level = 10 : i32, message = "bqd,bkd->bqk"}> : () -> ()
    %cst_14 = arith.constant dense<0.000000e+00> : vector<1x16x16xf32>
    %50 = tpu.matmul %45, %47, %cst_14 {dimension_numbers = #tpu.dot_dimension_numbers<[2], [2], [1], [1], [0, 0, 0, 1, 1, 1], [0], [0]>} : vector<1x16x8xf32>, vector<1x16x8xf32>, vector<1x16x16xf32> -> vector<1x16x16xf32>
    "tpu.trace_stop"() : () -> ()
    %cst_15 = arith.constant dense<0xFF800000> : vector<1x16xf32>
    %51 = vector.multi_reduction <maximumf>, %50, %cst_15 [2] : vector<1x16x16xf32> to vector<1x16xf32>
    %52 = vector.shape_cast %51 : vector<1x16xf32> to vector<1x16x1xf32>
    %53 = vector.broadcast %52 : vector<1x16x1xf32> to vector<1x16x16xf32>
    %54 = arith.subf %50, %53 : vector<1x16x16xf32>
    %55 = math.exp %54 : vector<1x16x16xf32>
    %cst_16 = arith.constant dense<0.000000e+00> : vector<1x16xf32>
    %56 = vector.multi_reduction <add>, %55, %cst_16 [2] : vector<1x16x16xf32> to vector<1x16xf32>
    %57 = vector.shape_cast %56 : vector<1x16xf32> to vector<1x16x1xf32>
    "tpu.trace_start"() <{level = 10 : i32, message = "bqk,bkd->bqd"}> : () -> ()
    %cst_17 = arith.constant dense<0.000000e+00> : vector<1x16x8xf32>
    %58 = tpu.matmul %55, %49, %cst_17 {dimension_numbers = #tpu.dot_dimension_numbers<[2], [1], [1], [2], [0, 0, 0, 1, 1, 2], [0], [0]>} : vector<1x16x16xf32>, vector<1x16x8xf32>, vector<1x16x8xf32> -> vector<1x16x8xf32>
    "tpu.trace_stop"() : () -> ()
    %59 = tpu.reciprocal %57 : vector<1x16x1xf32> -> vector<1x16x1xf32>
    %60 = vector.broadcast %59 : vector<1x16x1xf32> to vector<1x16x8xf32>
    %61 = arith.mulf %58, %60 : vector<1x16x8xf32>
    %62 = vector.extract_strided_slice %7 {offsets = [0, 24], sizes = [16, 8], strides = [1, 1]} : vector<16x96xf32> to vector<16x8xf32>
    %63 = vector.shape_cast %62 : vector<16x8xf32> to vector<1x16x8xf32>
    %64 = vector.extract_strided_slice %7 {offsets = [0, 56], sizes = [16, 8], strides = [1, 1]} : vector<16x96xf32> to vector<16x8xf32>
    %65 = vector.shape_cast %64 : vector<16x8xf32> to vector<1x16x8xf32>
    %66 = vector.extract_strided_slice %7 {offsets = [0, 88], sizes = [16, 8], strides = [1, 1]} : vector<16x96xf32> to vector<16x8xf32>
    %67 = vector.shape_cast %66 : vector<16x8xf32> to vector<1x16x8xf32>
    "tpu.trace_start"() <{level = 10 : i32, message = "bqd,bkd->bqk"}> : () -> ()
    %cst_18 = arith.constant dense<0.000000e+00> : vector<1x16x16xf32>
    %68 = tpu.matmul %63, %65, %cst_18 {dimension_numbers = #tpu.dot_dimension_numbers<[2], [2], [1], [1], [0, 0, 0, 1, 1, 1], [0], [0]>} : vector<1x16x8xf32>, vector<1x16x8xf32>, vector<1x16x16xf32> -> vector<1x16x16xf32>
    "tpu.trace_stop"() : () -> ()
    %cst_19 = arith.constant dense<0xFF800000> : vector<1x16xf32>
    %69 = vector.multi_reduction <maximumf>, %68, %cst_19 [2] : vector<1x16x16xf32> to vector<1x16xf32>
    %70 = vector.shape_cast %69 : vector<1x16xf32> to vector<1x16x1xf32>
    %71 = vector.broadcast %70 : vector<1x16x1xf32> to vector<1x16x16xf32>
    %72 = arith.subf %68, %71 : vector<1x16x16xf32>
    %73 = math.exp %72 : vector<1x16x16xf32>
    %cst_20 = arith.constant dense<0.000000e+00> : vector<1x16xf32>
    %74 = vector.multi_reduction <add>, %73, %cst_20 [2] : vector<1x16x16xf32> to vector<1x16xf32>
    %75 = vector.shape_cast %74 : vector<1x16xf32> to vector<1x16x1xf32>
    "tpu.trace_start"() <{level = 10 : i32, message = "bqk,bkd->bqd"}> : () -> ()
    %cst_21 = arith.constant dense<0.000000e+00> : vector<1x16x8xf32>
    %76 = tpu.matmul %73, %67, %cst_21 {dimension_numbers = #tpu.dot_dimension_numbers<[2], [1], [1], [2], [0, 0, 0, 1, 1, 2], [0], [0]>} : vector<1x16x16xf32>, vector<1x16x8xf32>, vector<1x16x8xf32> -> vector<1x16x8xf32>
    "tpu.trace_stop"() : () -> ()
    %77 = tpu.reciprocal %75 : vector<1x16x1xf32> -> vector<1x16x1xf32>
    %78 = vector.broadcast %77 : vector<1x16x1xf32> to vector<1x16x8xf32>
    %79 = arith.mulf %76, %78 : vector<1x16x8xf32>
    %80 = tpu.concatenate %25, %43, %61, %79 in 2 : vector<1x16x8xf32>, vector<1x16x8xf32>, vector<1x16x8xf32>, vector<1x16x8xf32> -> vector<1x16x32xf32>
    %81 = vector.shape_cast %80 : vector<1x16x32xf32> to vector<16x32xf32>
    %c0_22 = arith.constant 0 : index
    %c0_23 = arith.constant 0 : index
    %c0_24 = arith.constant 0 : index
    %82 = vector.load %arg4[%c0_22, %c0_23, %c0_24] : memref<1x32x32xf32, #tpu.memory_space<vmem>>, vector<1x32x32xf32>
    %83 = vector.shape_cast %82 : vector<1x32x32xf32> to vector<32x32xf32>
    %cst_25 = arith.constant dense<0.000000e+00> : vector<16x32xf32>
    %84 = tpu.matmul %81, %83, %cst_25 {dimension_numbers = #tpu.dot_dimension_numbers<[1], [0], [0], [1], [0, 0, 1, 1], [], []>} : vector<16x32xf32>, vector<32x32xf32>, vector<16x32xf32> -> vector<16x32xf32>
    %c0_26 = arith.constant 0 : index
    %c0_27 = arith.constant 0 : index
    %c0_28 = arith.constant 0 : index
    %85 = vector.load %arg7[%c0_26, %c0_27, %c0_28] : memref<1x16x32xf32, #tpu.memory_space<vmem>>, vector<1x16x32xf32>
    %86 = vector.shape_cast %84 : vector<16x32xf32> to vector<1x16x32xf32>
    %87 = arith.addf %85, %86 : vector<1x16x32xf32>
    %c0_29 = arith.constant 0 : index
    %c0_30 = arith.constant 0 : index
    %c0_31 = arith.constant 0 : index
    %88 = vector.load %arg7[%c0_29, %c0_30, %c0_31] : memref<1x16x32xf32, #tpu.memory_space<vmem>>, vector<1x16x32xf32>
    tpu.vector_store %arg7[%c0_29, %c0_30, %c0_31], %87 {strides = array<i32>} : memref<1x16x32xf32, #tpu.memory_space<vmem>>, vector<1x16x32xf32>,
    %c0_i32_32 = arith.constant 0 : i32
    %89 = arith.cmpi eq, %arg1, %c0_i32_32 : i32
    %90 = arith.extui %89 : i1 to i32
    %c0_i32_33 = arith.constant 0 : i32
    %91 = arith.cmpi ne, %90, %c0_i32_33 : i32
    scf.if %91 {
      %c0_34 = arith.constant 0 : index
      %c0_35 = arith.constant 0 : index
      %c0_36 = arith.constant 0 : index
      %92 = vector.load %arg7[%c0_34, %c0_35, %c0_36] : memref<1x16x32xf32, #tpu.memory_space<vmem>>, vector<1x16x32xf32>
      %c0_37 = arith.constant 0 : index
      %c0_38 = arith.constant 0 : index
      %93 = vector.load %arg5[%c0_37, %c0_38] : memref<1x32xf32, #tpu.memory_space<vmem>>, vector<1x32xf32>
      %94 = vector.shape_cast %93 : vector<1x32xf32> to vector<1x1x32xf32>
      %95 = vector.broadcast %94 : vector<1x1x32xf32> to vector<1x16x32xf32>
      %96 = arith.addf %92, %95 : vector<1x16x32xf32>
      %c0_39 = arith.constant 0 : index
      %c0_40 = arith.constant 0 : index
      %c0_41 = arith.constant 0 : index
      %97 = vector.load %arg6[%c0_39, %c0_40, %c0_41] : memref<1x16x32xf32, #tpu.memory_space<vmem>>, vector<1x16x32xf32>
      tpu.vector_store %arg6[%c0_39, %c0_40, %c0_41], %96 {strides = array<i32>} : memref<1x16x32xf32, #tpu.memory_space<vmem>>, vector<1x16x32xf32>,
    } else {
    }
    return
  }
  func.func @transform_0(%arg0: i32, %arg1: i32) -> (i32, i32, i32) {
    %c0_i32 = arith.constant 0 : i32
    %c0_i32_0 = arith.constant 0 : i32
    %c0_i32_1 = arith.constant 0 : i32
    return %arg0, %c0_i32, %c0_i32_0 : i32, i32, i32
  }
  func.func @transform_1(%arg0: i32, %arg1: i32) -> (i32, i32, i32) {
    %c0_i32 = arith.constant 0 : i32
    %c0_i32_0 = arith.constant 0 : i32
    %c0_i32_1 = arith.constant 0 : i32
    return %arg1, %c0_i32, %c0_i32_0 : i32, i32, i32
  }
  func.func @transform_2(%arg0: i32, %arg1: i32) -> (i32, i32, i32) {
    %c0_i32 = arith.constant 0 : i32
    %c0_i32_0 = arith.constant 0 : i32
    %c0_i32_1 = arith.constant 0 : i32
    return %arg1, %c0_i32, %c0_i32_0 : i32, i32, i32
  }
  func.func @transform_3(%arg0: i32, %arg1: i32) -> (i32, i32) {
    %c0_i32 = arith.constant 0 : i32
    %c0_i32_0 = arith.constant 0 : i32
    %c0_i32_1 = arith.constant 0 : i32
    return %c0_i32, %c0_i32_0 : i32, i32
  }
  func.func @transform_4(%arg0: i32, %arg1: i32) -> (i32, i32, i32) {
    %c0_i32 = arith.constant 0 : i32
    %c0_i32_0 = arith.constant 0 : i32
    %c0_i32_1 = arith.constant 0 : i32
    return %arg0, %c0_i32, %c0_i32_0 : i32, i32, i32
  }
}

</mosaic_0001>

<bundles_post_ra>
// kernel: tpu_custom_call.1
= control target key start
LH: loop header
LB: loop body
LE: loop exit
PB: predicated region body
PF: predicated region fallthrough
CT: control target
= control target key end

     0   :  { %9 = vsyncpa [#allocation4], 0  ;;  %s2525_s0 = inlined_call_operand.hbm [shape: f32[2,16,32], index: 0, kind: input, shape index: {}]   ;;  %s2526_s1 = inlined_call_operand.hbm [shape: f32[1,32,96], index: 1, kind: input, shape index: {}]   ;;  %s2527_s2 = inlined_call_operand.hbm [shape: f32[1,32,32], index: 2, kind: input, shape index: {}]   ;;  %s2528_s3 = inlined_call_operand.hbm [shape: f32[1,32], index: 3, kind: input, shape index: {}]   ;;  %s2529_s4 = inlined_call_operand.hbm [shape: f32[2,16,32], index: 4, kind: output, shape index: {}]  }
   0x1   :  { %11 = vsyncpa [#allocation4 + $0x1], 0 }
   0x2   :  { %12 = vsyncpa [#allocation7], 0 }
   0x3   :  { %13 = vsyncpa [#allocation10], 0 }
   0x4   :  { %14 = vsyncpa [#allocation5], 0 }
   0x5   :  { %16 = vsyncpa [#allocation5 + $0x1], 0  ;;  %s2114_s15 = smov 0   ;;  %s2116_s16 = smov 0  }
   0x6   :  { %s2118_s17 = smov 0   ;;  %s2120_s18 = smov 0  }
   0x7   :  { %s2122_s19 = smov 0   ;;  %s2124_s20 = smov 0  }
   0x8 LB: > { %s1447_s21 = sadd.s32 4294967295, %s2064_s20   ;;  %s1448_s22 = sadd.s32 4294967294, %s2064_s20   ;;  %s2064_s20 = sphi %s2124_s20, %s22_s20   ;;  %s2060_s19 = sphi %s2122_s19, %s2558_s19   ;;  %s2056_s18 = sphi %s2120_s18, %s2557_s18   ;;  %s2052_s17 = sphi %s2118_s17, %s2556_s17   ;;  %s2048_s16 = sphi %s2116_s16, %s2555_s16   ;;  %s2044_s15 = sphi %s2114_s15, %s2554_s15  }
   0x9   : > { %p54_p0 = scmp.ne.s32.totalorder %s2048_s16, %s2044_s15  ;;  %p2148_p1 = scmp.eq.s32.totalorder %s1447_s21, 0 }
   0xa   : > { %p2152_p2 = scmp.eq.s32.totalorder %s1447_s21, 1  ;;  %p157_p3 = scmp.eq.s32.totalorder %s1448_s22, 1 }
   0xb   : > { %s2535_s23 = scalar_select %p2148_p1, 1, 0 }
   0xc   : > { %s2536_s24 = scalar_select %p2152_p2, 1, 0 }
   0xd   : > { %p2158_p4 = por %p2148_p1, %p54_p0  ;;  %p1449_p5 = scmp.ge.s32.totalorder %s2064_s20, 1 }
   0xe   : > { %p2163_p6 = por %p157_p3, %p54_p0  ;;  %p164_p7 = scmp.lt.s32.totalorder %s2064_s20, 3 }
   0xf   : > { %s2537_s25 = scalar_select %p2158_p4, 1, 0 }
  0x10   : > { %s2538_s26 = scalar_select %p2163_p6, 1, 0 }
  0x11   : > { %p2168_p8 = pnand %p1449_p5, %p164_p7  ;;  %s2066_s28 = smov [#allocation6]  }
  0x12   : > { %2539 = sst [smem:[#allocation16_spill]] %s2538_s26  ;;  %s179_s29 = sshll.u32 %s2066_s28, 4  ;;  %s2172_s29 = int_to_ptr.vmem [resolvable:$true] %s179_s29 }
  0x13   : > { %s2540_s27 = scalar_select %p2168_p8, 1, 0 }
  0x14   : > { %p1693_p9 = pneg %p2168_p8  ;;  %s2067_s5 = smov [#allocation8]  }
  0x15   : > { %s195_s6 = sshll.u32 %s2067_s5, 4  ;;  %s2068_s7 = smov [#allocation9]   ;;  %s2183_s6 = int_to_ptr.vmem [resolvable:$true] %s195_s6 }
  0x16   : > { %p2179_p11 = pnand %p1693_p9, %p2148_p1  ;;  %s2185_s8 = sshll.u32 %s2068_s7, 4  ;;  %s210_s8 = int_to_ptr.vmem [resolvable:$true] %s2185_s8 }
  0x17   : > { %s1860_s11 = scalar_lea.hbm %s2526_s1, 512 }
  0x18   : > { %p1861_p12 = scmp.ne.s32.totalorder %s2526_s1, %s1860_s11  ;;  %p2195_p13 = pneg %p2179_p11 }
  0x19   : > { %p1867_p5 = scmp.lt.u32.totalorder %s1860_s11, %s2526_s1 }
  0x1a   : > { %p1863_p0 = pnand %p2195_p13, %p1861_p12 }
  0x1c   : > { %p1864_p3 = pneg %p1863_p0 }
  0x1e   : > { %p1869_p7 = pnand %p1867_p5, %p1864_p3 }
  0x20   : > { %1872 = shalt.err (!%p1869_p7)
}
  0x21   : > { %s1873_s28 = scalar_lea.vmem %s2172_s29, 512  ;;  %p1881_p1 = scmp.lt.s32.totalorder %s2172_s29, %s2172_s29 }
  0x22   : > { %p1874_p9 = scmp.ne.s32.totalorder %s2172_s29, %s1873_s28  ;;  %p1882_p4 = scmp.lt.s32.totalorder %s1873_s28, %s1873_s28 }
  0x24   : > { %p1876_p10 = pnand %p1874_p9, %p2195_p13  ;;  %p1883_p12 = por %p1882_p4, %p1881_p1 }
  0x26   : > { %p1877_p6 = pneg %p1876_p10 }
  0x28   : > { %p1884_p0 = pnand %p1883_p12, %p1877_p6 }
  0x2a   : > { %1887 = shalt.err (!%p1884_p0)
}
  0x2b   : > { %s2069_s5 = smov 128   ;;  %s2070_s7 = smov 8  }
  0x2c   : > { %1696 = dma.hbm_to_vmem [thread:$0]  (!%p2179_p11), %s2526_s1, 512, %s2172_s29, [#allocation7], %s2069_s5, %s2069_s5, %s2070_s7  }
  0x2d   : > { %s1888_s13 = scalar_lea.hbm %s2527_s2, 512 }
  0x2e   : > { %p1889_p1 = scmp.ne.s32.totalorder %s2527_s2, %s1888_s13  ;;  %p1895_p10 = scmp.lt.u32.totalorder %s1888_s13, %s2527_s2 }
  0x30   : > { %p1891_p4 = pnand %p1889_p1, %p2195_p13 }
  0x32   : > { %p1892_p6 = pneg %p1891_p4 }
  0x34   : > { %p1897_p3 = pnand %p1895_p10, %p1892_p6 }
  0x36   : > { %1900 = shalt.err (!%p1897_p3)
}
  0x37   : > { %s1901_s29 = scalar_lea.vmem %s2183_s6, 512  ;;  %p1909_p12 = scmp.lt.s32.totalorder %s2183_s6, %s2183_s6 }
  0x38   : > { %p1902_p5 = scmp.ne.s32.totalorder %s2183_s6, %s1901_s29  ;;  %p1910_p0 = scmp.lt.s32.totalorder %s1901_s29, %s1901_s29 }
  0x3a   : > { %p1904_p7 = pnand %p1902_p5, %p2195_p13  ;;  %p1911_p1 = por %p1910_p0, %p1909_p12 }
  0x3c   : > { %p1905_p9 = pneg %p1904_p7 }
  0x3e   : > { %p1912_p4 = pnand %p1911_p1, %p1905_p9 }
  0x40   : > { %1915 = shalt.err (!%p1912_p4)
}
  0x41   : > { %1699 = dma.hbm_to_vmem [thread:$0]  (!%p2179_p11), %s2527_s2, 512, %s2183_s6, [#allocation7], %s2069_s5, %s2069_s5, %s2070_s7  }
  0x42   : > { %s1916_s12 = scalar_lea.hbm %s2528_s3, 16 }
  0x43   : > { %p1917_p6 = scmp.ne.s32.totalorder %s2528_s3, %s1916_s12  ;;  %p1923_p5 = scmp.lt.u32.totalorder %s1916_s12, %s2528_s3 }
  0x45   : > { %p1919_p10 = pnand %p1917_p6, %p2195_p13 }
  0x47   : > { %p1920_p3 = pneg %p1919_p10 }
  0x49   : > { %p1925_p7 = pnand %p1923_p5, %p1920_p3 }
  0x4b   : > { %1928 = shalt.err (!%p1925_p7)
}
  0x4c   : > { %s1929_s29 = scalar_lea.vmem %s210_s8, 16  ;;  %s1936_s6 = scalar_lea.vmem %s210_s8, 32 }
  0x4d   : > { %p1930_p9 = scmp.ne.s32.totalorder %s210_s8, %s1929_s29  ;;  %p1937_p1 = scmp.lt.s32.totalorder %s210_s8, %s210_s8 }
  0x4e   : > { %p1938_p4 = scmp.lt.s32.totalorder %s1936_s6, %s1929_s29 }
  0x4f   : > { %p1932_p12 = pnand %p1930_p9, %p2195_p13 }
  0x50   : > { %p1939_p8 = por %p1938_p4, %p1937_p1 }
  0x51   : > { %p1933_p0 = pneg %p1932_p12 }
  0x53   : > { %p1940_p2 = pnand %p1939_p8, %p1933_p0 }
  0x55   : > { %1943 = shalt.err (!%p1940_p2)
}
  0x56   : > { %1702 = dma.hbm_to_vmem [thread:$0]  (!%p2179_p11), %s2528_s3, 16, %s210_s8, [#allocation10]  }
  0x57   : > { %s41_s14 = sadd.s32 1, %s2052_s17  ;;  %s34_s10 = sadd.s32 1, %s2060_s19 }
  0x58   : > { %p48_p2 = scmp.ne.s32.totalorder %s2052_s17, %s2048_s16  ;;  %p36_p8 = scmp.ge.s32.totalorder %s34_s10, 2 }
  0x59   : > { %p49_p13 = scmp.eq.s32.totalorder %s2064_s20, 0  ;;  %p2543_p6 = scmp.ne.s32.totalorder %s2536_s24, 0 }
  0x5a   : > { %p1714_p3 = scmp.lt.s32.totalorder %s2064_s20, 2  ;;  %s2560_s10 = smov (%p36_p8, %s34_s10), 0 }
  0x5b   : > { %p2271_p10 = por %p2543_p6, %p48_p2  ;;  %p50_p5 = por %p49_p13, %p48_p2 }
  0x5c   : > { %s220_s11 = sand.u32 1, %s2052_s17   ;;  %s38_s12 = ssub.s32 %s2060_s19, %s2560_s10 }
  0x5d   : > { %p39_p7 = scmp.eq.s32.totalorder %s38_s12, 0  ;;  %s1454_s8 = sshll.u32 %s220_s11, 4 }
  0x5e   : > { %s1497_s13 = sshll.u32 %s2060_s19, 8  ;;  %s224_s29 = scalar_lea.vmem [#allocation3], %s1454_s8 }
  0x5f   : > { %s2283_s21 = scalar_select %p39_p7, %s2052_s17, %s41_s14  }
  0x60   : > { %s2288_s24 = scalar_lea.hbm %s2525_s0, %s1497_s13  ;;  %s231_s6 = sshll.u32 %s224_s29, 4  ;;  %s2290_s6 = int_to_ptr.vmem [resolvable:$true] %s231_s6 }
  0x61   : > { %p2294_p11 = pnand %p1714_p3, %p50_p5  ;;  %s2298_s9 = scalar_lea.sflag [#allocation4], %s220_s11 }
  0x62   : > { %s1944_s14 = scalar_lea.hbm %s2288_s24, 256  ;;  %s1949_s13 = scalar_lea.hbm %s2525_s0, 512 }
  0x63   : > { %p1945_p9 = scmp.ne.s32.totalorder %s2288_s24, %s1944_s14  ;;  %p1946_p12 = pneg %p2294_p11 }
  0x64   : > { %p1950_p4 = scmp.lt.u32.totalorder %s2288_s24, %s2525_s0  ;;  %p1951_p2 = scmp.lt.u32.totalorder %s1949_s13, %s1944_s14 }
  0x65   : > { %p1947_p0 = pnand %p1946_p12, %p1945_p9  ;;  %p1953_p13 = scmp.lt.u32.totalorder %s1944_s14, %s2288_s24 }
  0x66   : > { %p1952_p8 = por %p1951_p2, %p1950_p4 }
  0x67   : > { %p1948_p1 = pneg %p1947_p0 }
  0x68   : > { %p1954_p6 = por %p1953_p13, %p1952_p8 }
  0x6a   : > { %p1955_p3 = pnand %p1954_p6, %p1948_p1 }
  0x6c   : > { %1958 = shalt.err (!%p1955_p3)
}
  0x6d   : > { %s1959_s11 = scalar_lea.vmem %s2290_s6, 256  ;;  %s2071_s29 = smov [#allocation3]  }
  0x6e   : > { %p1960_p5 = scmp.ne.s32.totalorder %s2290_s6, %s1959_s11  ;;  %s1964_s12 = sshll.u32 %s2071_s29, 4  ;;  %s1965_s12 = int_to_ptr.vmem [resolvable:$false] %s1964_s12 }
  0x6f   : > { %s1966_s8 = scalar_lea.vmem %s1965_s12, 512  ;;  %p1967_p0 = scmp.lt.s32.totalorder %s2290_s6, %s1965_s12 }
  0x70   : > { %p1962_p7 = pnand %p1960_p5, %p1946_p12  ;;  %p1968_p4 = scmp.lt.s32.totalorder %s1966_s8, %s1959_s11 }
  0x72   : > { %p1963_p9 = pneg %p1962_p7  ;;  %p1969_p2 = por %p1968_p4, %p1967_p0 }
  0x74   : > { %p1970_p8 = pnand %p1969_p2, %p1963_p9 }
  0x76   : > { %1973 = shalt.err (!%p1970_p8)
}
  0x77   : > { %1706 = dma.hbm_to_vmem [thread:$0]  (!%p2294_p11), %s2288_s24, 256, %s2290_s6, %s2298_s9, %s2069_s5, %s2069_s5, %s2070_s7  }
  0x78   : > { %p2546_p12 = scmp.ne.s32.totalorder %s2540_s27, 0 }
  0x79   : > { %s2332_s14 = sand.u32 (!%p2546_p12), 1, %s2048_s16   ;;  %p2547_p1 = scmp.ne.s32.totalorder (!%p2546_p12), %s2537_s25, 0 }
  0x7a   : > { %243 = sbr.rel (%p2546_p12) target bundleno = 2572 (0xa0c), region = 36  ;;  %s1458_s13 = sshll.u32 (!%p2546_p12), %s2332_s14, 4 }
  0x7b   : > { %s246_s22 = scalar_lea.sflag (!%p2546_p12), [#allocation4], %s2332_s14  ;;  %s249_s26 = scalar_lea.vmem (!%p2546_p12), [#allocation3], %s1458_s13 }
  0x81   : > { %2027 = dma.done.wait (%p2547_p1), %s246_s22, 256  }
  0x82   : > { %2029 = vsyncadd (%p2547_p1), %s246_s22, 4294967040  ;;  %p2548_p11 = scmp.ne.s32.totalorder %s2535_s23, 0 }
  0x84   : > { %2031 = dma.done.wait (%p2548_p11), [#allocation7], 1024  }
  0x85   : > { %2033 = vsyncadd (%p2548_p11), [#allocation7], 4294966272 }
  0x86   : > { %2035 = dma.done.wait (%p2548_p11), [#allocation10], 16  }
  0x87   : > { %2037 = vsyncadd (%p2548_p11), [#allocation10], 4294967280  ;;  %vm290_vm0 = vcmask 261120   ;;  %v295_v0 = vld [vmem:[#allocation6] sm:$0xff]  ;;  %v296_v1 = vld [vmem:[#allocation6 + $0x8] sm:$0xff]  ;;  %vm387_vm1 = vcmask 64512  }
  0x88   : > { %v297_v2 = vld [vmem:[#allocation6 + $0x10] sm:$0xff]  ;;  %v1621_v3 = vpack.c.bf16 %v296_v1, %v295_v0  ;;  %v298_v4 = vld [vmem:[#allocation6 + $0x18] sm:$0xff]  ;;  %s2072_s23 = smov 96   ;;  %vm2365_vm2 = vmpackc.low %vm387_vm1, %vm387_vm1  ;;  %vm471_vm3 = vcmask 130048   ;;  %s2073_s25 = smov 64   ;;  %vm1209_vm4 = vcmask 195584  }
  0x89   : > { %v293_v5 = vld [vmem:[%s249_s26] sm:$0xff]  ;;  %v1625_v6 = vpack.c.bf16 %v298_v4, %v297_v2  ;;  %v294_v7 = vld [vmem:[%s249_s26 + $0x8] sm:$0xff]  ;;  %s2074_s27 = smov 88   ;;  %s2075_s5 = smov 120  }
  0x8a   : > { %1551 = vmatprep.mubr.msk.f32.mxu0 %vm290_vm0, %v293_v5  ;;  %1622 = vmatprep.subr.bf16.mxu0 %v1621_v3  ;;  %s2076_s7 = smov 48   ;;  %s2077_s24 = smov 56  }
  0x8b   : > { %1624 = vmatpush3.bf16.msra.mxu0 %v1621_v3  ;;  %s2078_s6 = smov 72   ;;  %s2079_s9 = smov 80  }
  0x8c   : > { %1626 = vmatprep.subr.bf16.mxu0 %v1625_v6  ;;  %s2080_s28 = smov 112   ;;  %s2081_s11 = smov 104  }
  0x8d   : > { %s2082_s29 = smov 40   ;;  %s2083_s12 = smov 8  }
  0x8e   : > { %s2084_s8 = smov 16   ;;  %s2086_s22 = smov 24  }
  0x8f   : > { %1628 = vmatpush3.bf16.msra.mxu0 %v1625_v6  ;;  %s1498_s26 = sshll.u32 %s2056_s18, 8  ;;  %s1320_s18 = scalar_lea.sflag [#allocation5], %s2332_s14 }
  0x92   : > { %1552 = vmatmul.mubr.msk.f32.vlgmr.msra.gmra.mrb[0].mxu0 %vm290_vm0, %v294_v7 }
 0x165   : > { %v2352_v8 = vpop.f32.mrb[0].mxu0 }
 0x166   : > { %v2354_v9 = vpop.f32.mrb[1].mxu0 }
 0x167   : > { %1558 = vmatprep.mubr.msk.f32.mxu1 %vm387_vm1, %v2354_v9  ;;  %v2360_v10 = vpack.i.bf16 %v2352_v8, %v2354_v9 }
 0x169   : > { %1789 = vrot.lane.b32.xlu0 %v2360_v10, %s2072_s23  ;;  %s285_s23 = scalar_lea.vmem [#allocation11], %s1458_s13 }
 0x1db   : > { %v1790_v11 = vpop.permute.xlu0 %1789 }
 0x1dc   : > { %v1792_v12 = vunpack.i.h.bf16 %v1790_v11  ;;  %v1791_v13 = vunpack.i.l.bf16 %v1790_v11 }
 0x1de   : > { %v1629_v15 = vpack.c.bf16 %v1792_v12, %v1791_v13 }
 0x1e0   : > { %1631 = vmatprep.subr.msk.bf16.mxu1 %vm2365_vm2, %v1629_v15 }
 0x1e1   : > { %1634 = vmatpush3.bf16.xpose.msk.msra.mxu1 %vm2365_vm2, %v1629_v15 }
 0x1e8   : > { %1559 = vmatmul.mubr.msk.f32.vlgmr.msra.gmra.mrb[0].mxu1 %vm387_vm1, %v2352_v8 }
 0x2bb   : > { %v1560_v16 = vpop.f32.mrb[0].mxu1 }
 0x2bc   : > { %v462_v17 = vpop.f32.mrb[1].mxu1  ;;  %v475_v18 = vsel %vm471_vm3, %v1560_v16, -inf }
 0x2bd   : > { %476 = vmax.xlane.f32.xlu1 %v475_v18  ;;  %v472_v19 = vsel %vm471_vm3, %v462_v17, -inf }
 0x2be   : > { %473 = vmax.xlane.f32.xlu0 %v472_v19 }
 0x2ce   : > { %1794 = vrot.lane.b32.xlu1 %v2360_v10, %s2073_s25  ;;  %s1333_s25 = sshll.u32 %s285_s23, 4  ;;  %s2473_s25 = int_to_ptr.vmem [resolvable:$true] %s1333_s25 }
 0x2cf   : > { %s1974_s13 = scalar_lea.vmem %s2473_s25, 256 }
 0x2d0   : > { %p1975_p13 = scmp.ne.s32.totalorder %s2473_s25, %s1974_s13 }
 0x2d2   : > { %1799 = vrot.lane.b32.xlu1 %v2360_v10, %s2074_s27  ;;  %p1976_p6 = pnand %p1975_p13, %p2271_p10 }
 0x2d4   : > { %p1977_p3 = pneg %p1976_p6 }
 0x2d6   : > { %581 = vrot.lane.b32.xlu1 %v2354_v9, %s2075_s5 }
 0x2da   : > { %583 = vrot.lane.b32.xlu1 %v2352_v8, %s2075_s5 }
 0x34a   : > { %v477_v20 = vpop.xlane.xlu1 %476 }
 0x34b   : > { %v479_v21 = vsub.f32 %v1560_v16, %v477_v20  ;;  %v474_v22 = vpop.xlane.xlu0 %473 }
 0x34c   : > { %v478_v23 = vsub.f32 %v462_v17, %v474_v22 }
 0x34d   : > { %v482_v24 = vmul.f32 1.442695, %v479_v21 }
 0x34e   : > { %v480_v25 = vmul.f32 1.442695, %v478_v23  ;;  %v1795_v26 = vpop.permute.xlu1 %1794 }
 0x34f   : > { %v1797_v27 = vunpack.i.h.bf16 %v1795_v26  ;;  %v1796_v28 = vunpack.i.l.bf16 %v1795_v26 }
 0x350   : > { %1828 = vpow2.f32 %v480_v25 }
 0x351   : > { %1830 = vpow2.f32 %v482_v24  ;;  %v1635_v29 = vpack.c.bf16 %v1797_v27, %v1796_v28 }
 0x352   : > { %v1800_v30 = vpop.permute.xlu1 %1799 }
 0x353   : > { %v1802_v31 = vunpack.i.h.bf16 %v1800_v30  ;;  %v1801_v32 = vunpack.i.l.bf16 %v1800_v30  ;;  %1636 = vmatprep.subr.bf16.mxu1 %v1635_v29 }
 0x354   : > { %1638 = vmatpush3.bf16.msra.mxu1 %v1635_v29 }
 0x355   : > { %v1639_v33 = vpack.c.bf16 %v1802_v31, %v1801_v32 }
 0x356   : > { %v582_v36 = vpop.permute.xlu1 %581 }
 0x357   : > { %1641 = vmatprep.subr.msk.bf16.mxu1 %vm2365_vm2, %v1639_v33 }
 0x35a   : > { %v2383_v34 = vpop.eup %1828  ;;  %v584_v37 = vpop.permute.xlu1 %583 }
 0x35b   : > { %v2385_v35 = vpop.eup %1830  ;;  %1565 = vmatprep.mubr.msk.f32.mxu1 %vm471_vm3, %v2383_v34 }
 0x35c   : > { %1566 = vmatmul.mubr.msk.f32.vlgmr.msra.gmra.mrb[2].mxu1 %vm471_vm3, %v2385_v35 }
 0x35d   : > { %1644 = vmatpush3.bf16.xpose.msk.msra.mxu1 %vm2365_vm2, %v1639_v33  ;;  %1572 = vmatprep.mubr.msk.f32.mxu1 %vm387_vm1, %v582_v36  ;;  %v487_v33 = vsel %vm471_vm3, %v2385_v35, 0.0 }
 0x364   : > { %1573 = vmatmul.mubr.msk.f32.vlgmr.msra.gmra.mrb[4].mxu1 %vm387_vm1, %v584_v37 }
 0x42f   : > { %v2395_v38 = vpop.f32.mrb[2].mxu1 }
 0x430   : > { %v2397_v39 = vpop.f32.mrb[3].mxu1 }
 0x437   : > { %v1574_v40 = vpop.f32.mrb[4].mxu1 }
 0x438   : > { %v663_v41 = vpop.f32.mrb[5].mxu1  ;;  %v675_v42 = vsel %vm471_vm3, %v1574_v40, -inf }
 0x439   : > { %676 = vmax.xlane.f32.xlu0 %v675_v42  ;;  %v672_v43 = vsel %vm471_vm3, %v663_v41, -inf }
 0x43a   : > { %673 = vmax.xlane.f32.xlu1 %v672_v43 }
 0x44b   : > { %1814 = vrot.lane.b32.xlu1 %v2360_v10, %s2076_s7  ;;  %s2471_s7 = scalar_lea.hbm %s2529_s4, %s1498_s26 }
 0x44f   : > { %1804 = vrot.lane.b32.xlu0 %v2360_v10, %s2077_s24  ;;  %1819 = vrot.lane.b32.xlu1 %v2360_v10, %s2078_s6  ;;  %s2087_s24 = smov [#allocation11]  }
 0x450   : > { %s1978_s6 = sshll.u32 %s2087_s24, 4  ;;  %s1979_s6 = int_to_ptr.vmem [resolvable:$false] %s1978_s6 }
 0x451   : > { %p1981_p5 = scmp.lt.s32.totalorder %s2473_s25, %s1979_s6 }
 0x453   : > { %1809 = vrot.lane.b32.xlu0 %v2360_v10, %s2079_s9  ;;  %s1980_s9 = scalar_lea.vmem %s1979_s6, 512 }
 0x454   : > { %p1982_p7 = scmp.lt.s32.totalorder %s1980_s9, %s1974_s13 }
 0x456   : > { %p1983_p9 = por %p1982_p7, %p1981_p5 }
 0x457   : > { %781 = vrot.lane.b32.xlu0 %v2354_v9, %s2080_s28 }
 0x458   : > { %p1984_p0 = pnand %p1983_p9, %p1977_p3 }
 0x45b   : > { %783 = vrot.lane.b32.xlu0 %v2352_v8, %s2080_s28 }
 0x4c6   : > { %v677_v44 = vpop.xlane.xlu0 %676 }
 0x4c7   : > { %v679_v45 = vsub.f32 %v1574_v40, %v677_v44  ;;  %v674_v46 = vpop.xlane.xlu1 %673 }
 0x4c8   : > { %v678_v47 = vsub.f32 %v663_v41, %v674_v46 }
 0x4c9   : > { %v682_v48 = vmul.f32 1.442695, %v679_v45 }
 0x4ca   : > { %v680_v49 = vmul.f32 1.442695, %v678_v47  ;;  %v1805_v50 = vpop.permute.xlu0 %1804 }
 0x4cb   : > { %v1807_v51 = vunpack.i.h.bf16 %v1805_v50  ;;  %v1806_v52 = vunpack.i.l.bf16 %v1805_v50  ;;  %v1815_v53 = vpop.permute.xlu1 %1814 }
 0x4cc   : > { %1832 = vpow2.f32 %v680_v49  ;;  %v1817_v54 = vunpack.i.h.bf16 %v1815_v53  ;;  %v1816_v55 = vunpack.i.l.bf16 %v1815_v53  ;;  %v484_v53 = vsel %vm471_vm3, %v2383_v34, 0.0  ;;  %v1212_v34 = vld [vmem:[#allocation8] sm:$0xff] }
 0x4cd   : > { %1834 = vpow2.f32 %v682_v48  ;;  %v1645_v56 = vpack.c.bf16 %v1807_v51, %v1806_v52 }
 0x4ce   : > { %v1655_v57 = vpack.c.bf16 %v1817_v54, %v1816_v55  ;;  %v1810_v58 = vpop.permute.xlu0 %1809 }
 0x4cf   : > { %v1812_v59 = vunpack.i.h.bf16 %v1810_v58  ;;  %v1811_v60 = vunpack.i.l.bf16 %v1810_v58  ;;  %1646 = vmatprep.subr.bf16.mxu0 %v1645_v56  ;;  %v1820_v61 = vpop.permute.xlu1 %1819 }
 0x4d0   : > { %v1822_v62 = vunpack.i.h.bf16 %v1820_v61  ;;  %v1821_v63 = vunpack.i.l.bf16 %v1820_v61  ;;  %1648 = vmatpush3.bf16.msra.mxu0 %v1645_v56  ;;  %1656 = vmatprep.subr.bf16.mxu1 %v1655_v57 }
 0x4d1   : > { %v1649_v0 = vpack.c.bf16 %v1812_v59, %v1811_v60  ;;  %1658 = vmatpush3.bf16.msra.mxu1 %v1655_v57 }
 0x4d2   : > { %v1659_v1 = vpack.c.bf16 %v1822_v62, %v1821_v63  ;;  %v782_v4 = vpop.permute.xlu0 %781  ;;  %v1213_v63 = vld [vmem:[#allocation8 + $0x8] sm:$0xff] }
 0x4d3   : > { %1651 = vmatprep.subr.msk.bf16.mxu0 %vm2365_vm2, %v1649_v0 }
 0x4d4   : > { %1661 = vmatprep.subr.msk.bf16.mxu1 %vm2365_vm2, %v1659_v1 }
 0x4d6   : > { %v1833_v2 = vpop.eup %1832  ;;  %v784_v5 = vpop.permute.xlu0 %783 }
 0x4d7   : > { %v1835_v3 = vpop.eup %1834  ;;  %1579 = vmatprep.mubr.msk.f32.mxu0 %vm471_vm3, %v1833_v2  ;;  %v684_v32 = vsel %vm471_vm3, %v1833_v2, 0.0  ;;  %v1215_v2 = vld [vmem:[#allocation8 + $0x18] sm:$0xff] }
 0x4d8   : > { %1580 = vmatmul.mubr.msk.f32.vlgmr.msra.gmra.mrb[2].mxu0 %vm471_vm3, %v1835_v3  ;;  %v687_v30 = vsel %vm471_vm3, %v1835_v3, 0.0 }
 0x4d9   : > { %1654 = vmatpush3.bf16.xpose.msk.msra.mxu0 %vm2365_vm2, %v1649_v0  ;;  %1586 = vmatprep.mubr.msk.f32.mxu0 %vm387_vm1, %v782_v4  ;;  %v1214_v0 = vld [vmem:[#allocation8 + $0x10] sm:$0xff] }
 0x4da   : > { %v1673_v3 = vpack.c.bf16 %v1215_v2, %v1214_v0 }
 0x4e0   : > { %1587 = vmatmul.mubr.msk.f32.vlgmr.msra.gmra.mrb[4].mxu0 %vm387_vm1, %v784_v5 }
 0x5ab   : > { %v2417_v6 = vpop.f32.mrb[2].mxu0 }
 0x5ac   : > { %v2419_v7 = vpop.f32.mrb[3].mxu0 }
 0x5b3   : > { %v1588_v11 = vpop.f32.mrb[4].mxu0 }
 0x5b4   : > { %v863_v12 = vpop.f32.mrb[5].mxu0  ;;  %v875_v13 = vsel %vm471_vm3, %v1588_v11, -inf }
 0x5b5   : > { %876 = vmax.xlane.f32.xlu0 %v875_v13  ;;  %v872_v15 = vsel %vm471_vm3, %v863_v12, -inf }
 0x5b6   : > { %873 = vmax.xlane.f32.xlu1 %v872_v15 }
 0x5c7   : > { %981 = vrot.lane.b32.xlu1 %v2354_v9, %s2081_s11 }
 0x5cb   : > { %983 = vrot.lane.b32.xlu1 %v2352_v8, %s2081_s11 }
 0x642   : > { %v877_v16 = vpop.xlane.xlu0 %876 }
 0x643   : > { %v879_v17 = vsub.f32 %v1588_v11, %v877_v16  ;;  %v874_v18 = vpop.xlane.xlu1 %873 }
 0x644   : > { %v878_v19 = vsub.f32 %v863_v12, %v874_v18 }
 0x645   : > { %v882_v20 = vmul.f32 1.442695, %v879_v17 }
 0x646   : > { %v880_v21 = vmul.f32 1.442695, %v878_v19 }
 0x647   : > { %v982_v24 = vpop.permute.xlu1 %981 }
 0x648   : > { %1836 = vpow2.f32 %v880_v21 }
 0x649   : > { %1838 = vpow2.f32 %v882_v20 }
 0x64b   : > { %v984_v8 = vpop.permute.xlu1 %983 }
 0x652   : > { %v1837_v22 = vpop.eup %1836 }
 0x653   : > { %v1839_v23 = vpop.eup %1838  ;;  %1593 = vmatprep.mubr.msk.f32.mxu1 %vm471_vm3, %v1837_v22  ;;  %v884_v14 = vsel %vm471_vm3, %v1837_v22, 0.0 }
 0x654   : > { %1594 = vmatmul.mubr.msk.f32.vlgmr.msra.gmra.mrb[6].mxu1 %vm471_vm3, %v1839_v23  ;;  %v887_v31 = vsel %vm471_vm3, %v1839_v23, 0.0 }
 0x655   : > { %1664 = vmatpush3.bf16.xpose.msk.msra.mxu1 %vm2365_vm2, %v1659_v1  ;;  %1600 = vmatprep.mubr.msk.f32.mxu1 %vm387_vm1, %v982_v24  ;;  %v1669_v1 = vpack.c.bf16 %v1213_v63, %v1212_v34 }
 0x65c   : > { %1601 = vmatmul.mubr.msk.f32.vlgmr.msra.gmra.mrb[8].mxu1 %vm387_vm1, %v984_v8 }
 0x727   : > { %v2431_v9 = vpop.f32.mrb[6].mxu1 }
 0x728   : > { %v968_v25 = vpop.f32.mrb[7].mxu1 }
 0x72f   : > { %v1602_v26 = vpop.f32.mrb[8].mxu1 }
 0x730   : > { %v1063_v27 = vpop.f32.mrb[9].mxu1  ;;  %v1075_v28 = vsel %vm471_vm3, %v1602_v26, -inf }
 0x731   : > { %1076 = vmax.xlane.f32.xlu0 %v1075_v28  ;;  %v1072_v29 = vsel %vm471_vm3, %v1063_v27, -inf }
 0x732   : > { %1073 = vmax.xlane.f32.xlu1 %v1072_v29 }
 0x736   : > { %688 = vadd.xlane.f32.xlu1 %v687_v30 }
 0x73a   : > { %885 = vadd.xlane.f32.xlu1 %v884_v14 }
 0x73e   : > { %888 = vadd.xlane.f32.xlu1 %v887_v31 }
 0x747   : > { %1824 = vrot.lane.b32.xlu0 %v2360_v10, %s2082_s29 }
 0x766   : > { %685 = vadd.xlane.f32.xlu0 %v684_v32 }
 0x76a   : > { %488 = vadd.xlane.f32.xlu0 %v487_v33 }
 0x7be   : > { %v1077_v36 = vpop.xlane.xlu0 %1076 }
 0x7bf   : > { %v1079_v37 = vsub.f32 %v1602_v26, %v1077_v36  ;;  %v1074_v40 = vpop.xlane.xlu1 %1073 }
 0x7c0   : > { %v1078_v41 = vsub.f32 %v1063_v27, %v1074_v40  ;;  %v1491_v40 = vld [vmem:[#allocation9] ss:$0 sm:$0xff] }
 0x7c1   : > { %v1082_v42 = vmul.f32 1.442695, %v1079_v37 }
 0x7c2   : > { %v1080_v43 = vmul.f32 1.442695, %v1078_v41  ;;  %v1825_v44 = vpop.permute.xlu0 %1824 }
 0x7c3   : > { %1840 = vpow2.f32 %v1082_v42  ;;  %v1827_v45 = vunpack.i.h.bf16 %v1825_v44  ;;  %v1826_v46 = vunpack.i.l.bf16 %v1825_v44  ;;  %v689_v47 = vpop.xlane.xlu1 %688 }
 0x7c4   : > { %1842 = vpow2.f32 %v1080_v43 }
 0x7c5   : > { %v1665_v10 = vpack.c.bf16 %v1827_v45, %v1826_v46  ;;  %1844 = vrcp.f32 %v689_v47 }
 0x7c7   : > { %1666 = vmatprep.subr.bf16.mxu0 %v1665_v10  ;;  %v886_v54 = vpop.xlane.xlu1 %885 }
 0x7c8   : > { %1668 = vmatpush3.bf16.msra.mxu0 %v1665_v10 }
 0x7c9   : > { %1670 = vmatprep.subr.bf16.mxu0 %v1669_v1 }
 0x7cb   : > { %v889_v56 = vpop.xlane.xlu1 %888 }
 0x7cd   : > { %v1841_v48 = vpop.eup %1840 }
 0x7ce   : > { %v1843_v49 = vpop.eup %1842  ;;  %v1087_v52 = vsel %vm471_vm3, %v1841_v48, 0.0 }
 0x7cf   : > { %v1845_v35 = vpop.eup %1844  ;;  %1607 = vmatprep.mubr.msk.f32.mxu0 %vm471_vm3, %v1843_v49  ;;  %v1084_v50 = vsel %vm471_vm3, %v1843_v49, 0.0 }
 0x7d0   : > { %1608 = vmatmul.mubr.msk.f32.vlgmr.msra.gmra.mrb[6].mxu0 %vm471_vm3, %v1841_v48  ;;  %1085 = vadd.xlane.f32.xlu1 %v1084_v50  ;;  %v780_v51 = vmul.f32 %v1845_v35, %v2417_v6  ;;  %v2085_v6 = vmov 0.0  }
 0x7d1   : > { %1672 = vmatpush3.bf16.msra.mxu0 %v1669_v1  ;;  %292 = vst.msk [vmem:[#allocation2 + $0x8] sm:$0xff] %vm290_vm0, %v2085_v6  ;;  %291 = vst.msk [vmem:[#allocation2] sm:$0xff] %vm290_vm0, %v2085_v6 }
 0x7d2   : > { %1185 = vrot.lane.b32.xlu0 %v780_v51, %s2083_s12  ;;  %1674 = vmatprep.subr.bf16.mxu0 %v1673_v3 }
 0x7d4   : > { %1088 = vadd.xlane.f32.xlu1 %v1087_v52 }
 0x7d5   : > { %1676 = vmatpush3.bf16.msra.mxu0 %v1673_v3 }
 0x7d8   : > { %485 = vadd.xlane.f32.xlu1 %v484_v53 }
 0x7f3   : > { %v686_v55 = vpop.xlane.xlu0 %685 }
 0x7f4   : > { %1846 = vrcp.f32 %v686_v55 }
 0x7f5   : > { %1848 = vrcp.f32 %v886_v54 }
 0x7f6   : > { %1850 = vrcp.f32 %v889_v56 }
 0x7f7   : > { %v489_v18 = vpop.xlane.xlu0 %488 }
 0x7fe   : > { %v1847_v57 = vpop.eup %1846 }
 0x7ff   : > { %v779_v58 = vmul.f32 %v1847_v57, %v2419_v7  ;;  %v1849_v59 = vpop.eup %1848 }
 0x800   : > { %v979_v60 = vmul.f32 %v1849_v59, %v968_v25  ;;  %v1851_v61 = vpop.eup %1850 }
 0x801   : > { %1183 = vrot.lane.b32.xlu1 %v779_v58, %s2083_s12  ;;  %v980_v62 = vmul.f32 %v1851_v61, %v2431_v9 }
 0x805   : > { %1191 = vrot.lane.b32.xlu1 %v979_v60, %s2084_s8 }
 0x809   : > { %1193 = vrot.lane.b32.xlu1 %v980_v62, %s2084_s8 }
 0x844   : > { %v1186_v8 = vpop.permute.xlu0 %1185 }
 0x85d   : > { %v1086_v4 = vpop.xlane.xlu1 %1085 }
 0x861   : > { %v1089_v5 = vpop.xlane.xlu1 %1088 }
 0x862   : > { %1852 = vrcp.f32 %v1089_v5 }
 0x863   : > { %1854 = vrcp.f32 %v1086_v4 }
 0x865   : > { %v486_v17 = vpop.xlane.xlu1 %485 }
 0x866   : > { %1856 = vrcp.f32 %v486_v17 }
 0x867   : > { %1858 = vrcp.f32 %v489_v18 }
 0x86c   : > { %v1853_v7 = vpop.eup %1852 }
 0x86d   : > { %v1855_v12 = vpop.eup %1854 }
 0x870   : > { %v1857_v21 = vpop.eup %1856 }
 0x871   : > { %v1859_v22 = vpop.eup %1858  ;;  %v579_v23 = vmul.f32 %v1857_v21, %v2397_v39  ;;  %v1297_v39 = vld [vmem:[#allocation2] sm:$0xff] }
 0x872   : > { %v580_v9 = vmul.f32 %v1859_v22, %v2395_v38  ;;  %v1298_v38 = vld [vmem:[#allocation2 + $0x8] sm:$0xff] }
 0x873   : > { %v1184_v19 = vpop.permute.xlu1 %1183 }
 0x874   : > { %v1205_v25 = vsel %vm387_vm1, %v579_v23, %v1184_v19  ;;  %v1206_v27 = vsel %vm387_vm1, %v580_v9, %v1186_v8 }
 0x877   : > { %v1192_v20 = vpop.permute.xlu1 %1191 }
 0x878   : > { %v1207_v28 = vsel %vm471_vm3, %v1205_v25, %v1192_v20 }
 0x87b   : > { %v1194_v24 = vpop.permute.xlu1 %1193 }
 0x87c   : > { %v1208_v30 = vsel %vm471_vm3, %v1206_v27, %v1194_v24 }
 0x8a3   : > { %v1609_v11 = vpop.f32.mrb[6].mxu0 }
 0x8a4   : > { %v1180_v13 = vmul.f32 %v1853_v7, %v1609_v11  ;;  %v1168_v15 = vpop.f32.mrb[7].mxu0 }
 0x8a5   : > { %v1179_v16 = vmul.f32 %v1855_v12, %v1168_v15 }
 0x8a6   : > { %1201 = vrot.lane.b32.xlu1 %v1180_v13, %s2086_s22 }
 0x8a7   : > { %1199 = vrot.lane.b32.xlu0 %v1179_v16, %s2086_s22 }
 0x918   : > { %v1202_v26 = vpop.permute.xlu1 %1201 }
 0x919   : > { %v1200_v29 = vpop.permute.xlu0 %1199  ;;  %v1211_v31 = vsel %vm1209_vm4, %v1208_v30, %v1202_v26 }
 0x91a   : > { %v1210_v14 = vsel %vm1209_vm4, %v1207_v28, %v1200_v29 }
 0x91b   : > { %1618 = vmatprep.mubr.msk.f32.mxu0 %vm290_vm0, %v1210_v14 }
 0x91c   : > { %1619 = vmatmul.mubr.msk.f32.vlgmr.msra.gmra.mrb[8].mxu0 %vm290_vm0, %v1211_v31 }
 0x9ef   : > { %v1620_v32 = vpop.f32.mrb[8].mxu0 }
 0x9f0   : > { %v1300_v33 = vadd.f32 %v1620_v32, %v1298_v38  ;;  %v1288_v36 = vpop.f32.mrb[9].mxu0 }
 0x9f1   : > { %v1299_v37 = vadd.f32 %v1297_v39, %v1288_v36 }
 0x9f2   : > { %1302 = vst.msk [vmem:[#allocation2 + $0x8] sm:$0xff] %vm290_vm0, %v1300_v33 }
 0x9f3   : > { %1301 = vst.msk [vmem:[#allocation2] sm:$0xff] %vm290_vm0, %v1299_v37 }
 0x9f9   : > { %v1307_v41 = vld [vmem:[#allocation2 + $0x8] sm:$0xff] }
 0x9fa   : > { %v1306_v42 = vld [vmem:[#allocation2] sm:$0xff]  ;;  %v1316_v43 = vadd.f32 %v1491_v40, %v1307_v41 }
 0x9fb   : > { %v1315_v44 = vadd.f32 %v1491_v40, %v1306_v42 }
 0x9fc   : > { %1318 = vst.msk [vmem:[%s285_s23 + $0x8] sm:$0xff] %vm290_vm0, %v1316_v43 }
 0x9fd   : > { %1317 = vst.msk [vmem:[%s285_s23] sm:$0xff] %vm290_vm0, %v1315_v44 }
 0x9fe   : > { %1987 = shalt.err (!%p1984_p0)
}
 0x9ff   : > { %s1988_s28 = scalar_lea.hbm %s2471_s7, 256  ;;  %s1992_s8 = scalar_lea.hbm %s2529_s4, 512 }
 0xa00   : > { %p1989_p4 = scmp.ne.s32.totalorder %s2471_s7, %s1988_s28  ;;  %p1993_p12 = scmp.lt.u32.totalorder %s2471_s7, %s2529_s4 }
 0xa01   : > { %p1994_p1 = scmp.lt.u32.totalorder %s1992_s8, %s1988_s28  ;;  %p1996_p13 = scmp.lt.u32.totalorder %s1988_s28, %s2471_s7 }
 0xa02   : > { %p1990_p2 = pnand %p1989_p4, %p2271_p10 }
 0xa03   : > { %p1995_p11 = por %p1994_p1, %p1993_p12 }
 0xa04   : > { %p1991_p8 = pneg %p1990_p2 }
 0xa05   : > { %p1997_p6 = por %p1996_p13, %p1995_p11 }
 0xa07   : > { %p1998_p3 = pnand %p1997_p6, %p1991_p8 }
 0xa09   : > { %2001 = shalt.err (!%p1998_p3)
}
 0xa0a   : > { %s2088_s23 = smov 128  }
 0xa0b   : > { %1691 = dma.vmem_to_hbm [thread:$0]  (%p2271_p10), %s2473_s25, 256, %s2471_s7, %s1320_s18, %s2088_s23, %s2088_s23, %s2083_s12  }
 0xa0c PF: > { %s2551_s27 = sld [smem:[#allocation16_spill]]  ;;  %s1348_s5 = sand.u32 1, %s2044_s15  }
 0xa0d   : > { %p2553_p7 = scmp.ge.s32.totalorder %s2064_s20, 2  ;;  %s1349_s13 = scalar_lea.sflag [#allocation5], %s1348_s5 }
 0xa12   : > { %p2552_p5 = scmp.ne.s32.totalorder %s2551_s27, 0 }
 0xa14   : > { %p1708_p9 = pnand %p2553_p7, %p2552_p5 }
 0xa16   : > { %2039 = dma.done.wait (!%p1708_p9), %s1349_s13, 256  }
 0xa17   : > { %2041 = vsyncadd (!%p1708_p9), %s1349_s13, 4294967040  ;;  %s22_s20 = sadd.s32 1, %s2064_s20   ;;  %s2554_s15 = smov %s2048_s16 }
 0xa18   : > { %p19_p0 = scmp.ge.s32.totalorder %s22_s20, 4   ;;  %s2555_s16 = smov %s2052_s17 }
 0xa19   : > { %s2556_s17 = smov %s2283_s21  ;;  %s2557_s18 = smov %s2060_s19 }
 0xa1a   : > { %s2558_s19 = smov %s2560_s10  ;;  %21 = sbr.rel (!%p19_p0) target bundleno = 8 (0x8), region = 103 }
 0xa21   :  { %1354 = vsyncpa [#allocation4], 1 }
 0xa22   :  { %1356 = vsyncpa [#allocation4 + $0x1], 1 }
 0xa23   :  { %1357 = vsyncpa [#allocation7], 1 }
 0xa24   :  { %1358 = vsyncpa [#allocation10], 1 }
 0xa25   :  { %1359 = vsyncpa [#allocation5], 1 }
 0xa26   :  { %1361 = vsyncpa [#allocation5 + $0x1], 1 }

</bundles_post_ra>
